<compile_context>
chip_gen: v5e
topology: v5e:2x2
jax: 0.10.0
libtpu: 0.0.40
codegen_flags: <defaults>
</compile_context>

<pallas_src>
import functools

import jax
import jax.numpy as jnp
from jax import lax
from jax.experimental import pallas as pl
from jax.experimental.pallas import tpu as pltpu


def _round_up(x, m):
    return ((x + m - 1) // m) * m


def _bayesian_kernel(x_ref, w_ref, b_ref, eps_ref, out_ref, *, num_classes, c_pad):
    """One batch tile: fused matmul -> reparameterized sample -> log_softmax."""
    x = x_ref[...]
    w = w_ref[...]

    # Single fused MXU matmul for both Linear layers: [TB, D] @ [D, 2*C_pad].
    fused = jnp.dot(x, w, preferred_element_type=jnp.float32) + b_ref[...]

    # Split (128-aligned slices -> no tile-crossing copies).
    mean = fused[:, :c_pad]
    logvar = fused[:, c_pad:]

    # Reparameterization trick: sample = mean + exp(0.5*logvar) * eps.
    std = jnp.exp(0.5 * logvar)
    sampled = mean + std * eps_ref[...]

    # Mask padded class lanes so they don't perturb the row max / exp-sum.
    lane = lax.broadcasted_iota(jnp.int32, sampled.shape, 1)
    sampled = jnp.where(lane < num_classes, sampled, jnp.float32(-1e30))

    # Numerically stable log_softmax over the (lane-dense) class axis.
    m = jnp.max(sampled, axis=1, keepdims=True)
    shifted = sampled - m
    lse = jnp.log(jnp.sum(jnp.exp(shifted), axis=1, keepdims=True))
    out_ref[...] = (shifted - lse).astype(out_ref.dtype)


def bayesian_forward(x, w_mean_t, b_mean, w_logvar_t, b_logvar, eps,
                     *, block_b=128, compute_dtype=None):
    """x:[B,D], w_*_t:[D,C], b_*:[C] or [1,C], eps:[B,C] -> log-probs [B,C]."""
    B, D = x.shape
    C = w_mean_t.shape[1]

    # --- Lane-dense class padding & fused weight packing (host-side, cheap). ---
    c_pad = _round_up(C, 128)
    w_fused = jnp.zeros((D, 2 * c_pad), jnp.float32)
    w_fused = w_fused.at[:, :C].set(w_mean_t.astype(jnp.float32))
    w_fused = w_fused.at[:, c_pad:c_pad + C].set(w_logvar_t.astype(jnp.float32))
    b_fused = jnp.zeros((1, 2 * c_pad), jnp.float32)
    b_fused = b_fused.at[:, :C].set(jnp.reshape(b_mean, (1, C)).astype(jnp.float32))
    b_fused = b_fused.at[:, c_pad:c_pad + C].set(
        jnp.reshape(b_logvar, (1, C)).astype(jnp.float32))

    # --- Batch tiling (sublane-aligned) + padding of x / eps. ---
    tb = min(block_b, _round_up(B, 8))
    b_pad = _round_up(B, tb)
    x_p = jnp.zeros((b_pad, D), jnp.float32).at[:B, :].set(x.astype(jnp.float32))
    eps_p = jnp.zeros((b_pad, c_pad), jnp.float32).at[:B, :C].set(eps.astype(jnp.float32))

    # Optional bf16 MXU inputs (f32 accumulate) for large D on v6e/v7x.
    if compute_dtype is not None:
        x_p = x_p.astype(compute_dtype)
        w_fused = w_fused.astype(compute_dtype)

    grid = (b_pad // tb,)
    kernel = functools.partial(_bayesian_kernel, num_classes=C, c_pad=c_pad)

    out = pl.pallas_call(
        kernel,
        out_shape=jax.ShapeDtypeStruct((b_pad, c_pad), jnp.float32),
        grid=grid,
        in_specs=[
            pl.BlockSpec((tb, D), lambda i: (i, 0)),            # x tile
            pl.BlockSpec((D, 2 * c_pad), lambda i: (0, 0)),     # fused weights (resident)
            pl.BlockSpec((1, 2 * c_pad), lambda i: (0, 0)),     # fused biases  (resident)
            pl.BlockSpec((tb, c_pad), lambda i: (i, 0)),        # eps tile
        ],
        out_specs=pl.BlockSpec((tb, c_pad), lambda i: (i, 0)),
        compiler_params=pltpu.CompilerParams(
            dimension_semantics=("parallel",)),
    )(x_p, w_fused, b_fused, eps_p)

    # Strip batch / class padding.
    return out[:B, :C]


if __name__ == "__main__":
    batch = 8
    input_dim = 32
    num_classes = 16

    key = jax.random.PRNGKey(0)
    kx, kwm, kbm, kwl, kbl, keps = jax.random.split(key, 6)

    # Deterministic parameter init (mimics nn.Linear's uniform(-1/sqrt(D), 1/sqrt(D))).
    bound = 1.0 / jnp.sqrt(jnp.float32(input_dim))
    x = jax.random.normal(kx, (batch, input_dim), dtype=jnp.float32)
    w_mean_t = jax.random.uniform(kwm, (input_dim, num_classes), jnp.float32, -bound, bound)
    b_mean = jax.random.uniform(kbm, (num_classes,), jnp.float32, -bound, bound)
    w_logvar_t = jax.random.uniform(kwl, (input_dim, num_classes), jnp.float32, -bound, bound)
    b_logvar = jax.random.uniform(kbl, (num_classes,), jnp.float32, -bound, bound)
    # epsilon ~ N(0,1) generated deterministically outside the kernel
    # (stands in for torch.randn_like).
    eps = jax.random.normal(keps, (batch, num_classes), dtype=jnp.float32)

    out = bayesian_forward(x, w_mean_t, b_mean, w_logvar_t, b_logvar, eps)
    out = jax.block_until_ready(out)

    # Reference check in plain JAX.
    mean_ref = x @ w_mean_t + b_mean[None, :]
    logvar_ref = x @ w_logvar_t + b_logvar[None, :]
    sampled_ref = mean_ref + jnp.exp(0.5 * logvar_ref) * eps
    ref = jax.nn.log_softmax(sampled_ref, axis=1)
    assert out.shape == (batch, num_classes)
    assert jnp.allclose(out, ref, atol=1e-5, rtol=1e-5), "mismatch vs reference"

    print("KERNEL_OK")
</pallas_src>

<mosaic_0001>
module attributes {stable_mosaic.version = 11 : i64} {
  func.func @_bayesian_kernel(%arg0: i32, %arg1: memref<8x32xf32, #tpu.memory_space<vmem>>, %arg2: memref<32x256xf32, #tpu.memory_space<vmem>>, %arg3: memref<1x256xf32, #tpu.memory_space<vmem>>, %arg4: memref<8x128xf32, #tpu.memory_space<vmem>>, %arg5: memref<8x128xf32, #tpu.memory_space<vmem>>) attributes {dimension_semantics = [#tpu.dimension_semantics<parallel>], iteration_bounds = array<i64: 1>, scalar_prefetch = 0 : i64, scratch_operands = 0 : i64, tpu.core_type = #tpu.core_type<tc>, window_params = [{transform_indices = @transform_0, window_bounds = array<i64: 8, 32>}, {pipeline_mode = #tpu.pipeline_mode<synchronous>, transform_indices = @transform_1, window_bounds = array<i64: 32, 256>}, {pipeline_mode = #tpu.pipeline_mode<synchronous>, transform_indices = @transform_2, window_bounds = array<i64: 1, 256>}, {transform_indices = @transform_3, window_bounds = array<i64: 8, 128>}, {transform_indices = @transform_4, window_bounds = array<i64: 8, 128>}]} {
    %c0 = arith.constant 0 : index
    %c0_0 = arith.constant 0 : index
    %0 = vector.load %arg1[%c0, %c0_0] : memref<8x32xf32, #tpu.memory_space<vmem>>, vector<8x32xf32>
    %c0_1 = arith.constant 0 : index
    %c0_2 = arith.constant 0 : index
    %1 = vector.load %arg2[%c0_1, %c0_2] : memref<32x256xf32, #tpu.memory_space<vmem>>, vector<32x256xf32>
    %cst = arith.constant dense<0.000000e+00> : vector<8x256xf32>
    %2 = tpu.matmul %0, %1, %cst {dimension_numbers = #tpu.dot_dimension_numbers<[1], [0], [0], [1], [0, 0, 1, 1], [], []>} : vector<8x32xf32>, vector<32x256xf32>, vector<8x256xf32> -> vector<8x256xf32>
    %c0_3 = arith.constant 0 : index
    %c0_4 = arith.constant 0 : index
    %3 = vector.load %arg3[%c0_3, %c0_4] : memref<1x256xf32, #tpu.memory_space<vmem>>, vector<1x256xf32>
    %4 = vector.broadcast %3 : vector<1x256xf32> to vector<8x256xf32>
    %5 = arith.addf %2, %4 : vector<8x256xf32>
    %6 = vector.extract_strided_slice %5 {offsets = [0, 0], sizes = [8, 128], strides = [1, 1]} : vector<8x256xf32> to vector<8x128xf32>
    %7 = vector.extract_strided_slice %5 {offsets = [0, 128], sizes = [8, 128], strides = [1, 1]} : vector<8x256xf32> to vector<8x128xf32>
    %cst_5 = arith.constant 5.000000e-01 : f32
    %8 = vector.broadcast %cst_5 : f32 to vector<8x128xf32>
    %9 = arith.mulf %8, %7 : vector<8x128xf32>
    %10 = math.exp %9 : vector<8x128xf32>
    %c0_6 = arith.constant 0 : index
    %c0_7 = arith.constant 0 : index
    %11 = vector.load %arg4[%c0_6, %c0_7] : memref<8x128xf32, #tpu.memory_space<vmem>>, vector<8x128xf32>
    %12 = arith.mulf %10, %11 : vector<8x128xf32>
    %13 = arith.addf %6, %12 : vector<8x128xf32>
    %14 = tpu.iota {dimensions = array<i32: 1>} : vector<8x128xi32>
    %c16_i32 = arith.constant 16 : i32
    %15 = vector.broadcast %c16_i32 : i32 to vector<8x128xi32>
    %16 = arith.cmpi slt, %14, %15 : vector<8x128xi32>
    %cst_8 = arith.constant -1.000000e+30 : f32
    %17 = vector.broadcast %cst_8 : f32 to vector<8x128xf32>
    %18 = arith.select %16, %13, %17 : vector<8x128xi1>, vector<8x128xf32>
    %cst_9 = arith.constant dense<0xFF800000> : vector<8xf32>
    %19 = vector.multi_reduction <maximumf>, %18, %cst_9 [1] : vector<8x128xf32> to vector<8xf32>
    %20 = vector.shape_cast %19 : vector<8xf32> to vector<8x1xf32>
    %21 = vector.broadcast %20 : vector<8x1xf32> to vector<8x128xf32>
    %22 = arith.subf %18, %21 : vector<8x128xf32>
    %23 = math.exp %22 : vector<8x128xf32>
    %cst_10 = arith.constant dense<0.000000e+00> : vector<8xf32>
    %24 = vector.multi_reduction <add>, %23, %cst_10 [1] : vector<8x128xf32> to vector<8xf32>
    %25 = vector.shape_cast %24 : vector<8xf32> to vector<8x1xf32>
    %26 = math.log %25 : vector<8x1xf32>
    %27 = vector.broadcast %26 : vector<8x1xf32> to vector<8x128xf32>
    %28 = arith.subf %22, %27 : vector<8x128xf32>
    %c0_11 = arith.constant 0 : index
    %c0_12 = arith.constant 0 : index
    %29 = vector.load %arg5[%c0_11, %c0_12] : memref<8x128xf32, #tpu.memory_space<vmem>>, vector<8x128xf32>
    tpu.vector_store %arg5[%c0_11, %c0_12], %28 {strides = array<i32>} : memref<8x128xf32, #tpu.memory_space<vmem>>, vector<8x128xf32>,
    return
  }
  func.func @transform_0(%arg0: i32) -> (i32, i32) {
    %c0_i32 = arith.constant 0 : i32
    %c0_i32_0 = arith.constant 0 : i32
    return %arg0, %c0_i32 : i32, i32
  }
  func.func @transform_1(%arg0: i32) -> (i32, i32) {
    %c0_i32 = arith.constant 0 : i32
    %c0_i32_0 = arith.constant 0 : i32
    %c0_i32_1 = arith.constant 0 : i32
    return %c0_i32, %c0_i32_0 : i32, i32
  }
  func.func @transform_2(%arg0: i32) -> (i32, i32) {
    %c0_i32 = arith.constant 0 : i32
    %c0_i32_0 = arith.constant 0 : i32
    %c0_i32_1 = arith.constant 0 : i32
    return %c0_i32, %c0_i32_0 : i32, i32
  }
  func.func @transform_3(%arg0: i32) -> (i32, i32) {
    %c0_i32 = arith.constant 0 : i32
    %c0_i32_0 = arith.constant 0 : i32
    return %arg0, %c0_i32 : i32, i32
  }
  func.func @transform_4(%arg0: i32) -> (i32, i32) {
    %c0_i32 = arith.constant 0 : i32
    %c0_i32_0 = arith.constant 0 : i32
    return %arg0, %c0_i32 : i32, i32
  }
}

</mosaic_0001>

<bundles_post_ra>
// kernel: tpu_custom_call.1
= control target key start
LH: loop header
LB: loop body
LE: loop exit
PB: predicated region body
PF: predicated region fallthrough
CT: control target
= control target key end

     0   :  { %9 = vsyncpa [#allocation3], 0  ;;  %s364_s0 = inlined_call_operand.hbm [shape: f32[8,32], index: 0, kind: input, shape index: {}]   ;;  %s365_s1 = inlined_call_operand.hbm [shape: f32[32,256], index: 1, kind: input, shape index: {}]   ;;  %s366_s2 = inlined_call_operand.hbm [shape: f32[1,256], index: 2, kind: input, shape index: {}]   ;;  %s367_s3 = inlined_call_operand.hbm [shape: f32[8,128], index: 3, kind: input, shape index: {}]   ;;  %s368_s4 = inlined_call_operand.hbm [shape: f32[8,128], index: 4, kind: output, shape index: {}]  }
   0x1   :  { %10 = vsyncpa [#allocation6], 0 }
   0x2   :  { %11 = vsyncpa [#allocation9], 0  ;;  %s28_s17 = sshll.u32 %s365_s1, 4  ;;  %s29_s17 = int_to_ptr.hbm [resolvable:$true] %s28_s17 }
   0x3   :  { %12 = vsyncpa [#allocation4], 0  ;;  %s317_s18 = smov [#allocation5]   ;;  %s18_s22 = sshll.u32 %s364_s0, 4  ;;  %s19_s22 = int_to_ptr.hbm [resolvable:$true] %s18_s22 }
   0x4   :  { %s30_s19 = sshll.u32 %s317_s18, 4  ;;  %s318_s23 = smov 256   ;;  %s31_s19 = int_to_ptr.vmem [resolvable:$true] %s30_s19 }
   0x5   :  { %s319_s24 = smov 16   ;;  %s320_s25 = smov [#allocation2]  }
   0x6   :  { %36 = dma.hbm_to_vmem [thread:$0]  %s29_s17, 1024, %s31_s19, [#allocation6], %s318_s23, %s318_s23, %s319_s24  }
   0x7   :  { %s20_s26 = sshll.u32 %s320_s25, 4  ;;  %s42_s29 = sshll.u32 %s366_s2, 4  ;;  %s21_s26 = int_to_ptr.vmem [resolvable:$true] %s20_s26  ;;  %s43_s29 = int_to_ptr.hbm [resolvable:$true] %s42_s29 }
   0x8   :  { %23 = dma.hbm_to_vmem [thread:$0]  %s19_s22, 128, %s21_s26, [#allocation3]  }
   0x9   :  { %s53_s5 = sshll.u32 %s367_s3, 4  ;;  %s321_s6 = smov [#allocation7]   ;;  %s54_s5 = int_to_ptr.hbm [resolvable:$true] %s53_s5 }
   0xa   :  { %s44_s7 = sshll.u32 %s321_s6, 4  ;;  %s322_s0 = smov [#allocation8]   ;;  %s45_s7 = int_to_ptr.vmem [resolvable:$true] %s44_s7 }
   0xb   :  { %47 = dma.hbm_to_vmem [thread:$0]  %s43_s29, 32, %s45_s7, [#allocation6]  }
   0xc   :  { %s55_s8 = sshll.u32 %s322_s0, 4  ;;  %s56_s8 = int_to_ptr.vmem [resolvable:$true] %s55_s8 }
   0xd   :  { %58 = dma.hbm_to_vmem [thread:$0]  %s54_s5, 128, %s56_s8, [#allocation9]  }
   0xe   :  { %309 = dma.done.wait [#allocation3], 128  }
   0xf   :  { %310 = vsyncadd [#allocation3], 4294967168 }
  0x10   :  { %311 = dma.done.wait [#allocation6], 1056  }
  0x11   :  { %312 = vsyncadd [#allocation6], 4294966240 }
  0x12   :  { %313 = dma.done.wait [#allocation9], 128  }
  0x13   :  { %314 = vsyncadd [#allocation9], 4294967168  ;;  %v83_v0 = vld [vmem:[#allocation5 + $0x38] sm:$0xff]  ;;  %v81_v1 = vld [vmem:[#allocation5 + $0x28] sm:$0xff]  ;;  %vm90_vm0 = vcmask 261120   ;;  %v140_v15 = vlaneseq  ;;  %s323_s2 = smov [#allocation10]  }
  0x14   :  { %126 = vmatpush.msra.mxu1 %v83_v0  ;;  %v82_v2 = vld [vmem:[#allocation5 + $0x30] sm:$0xff]  ;;  %v79_v3 = vld [vmem:[#allocation5 + $0x18] sm:$0xff]  ;;  %v80_v4 = vld [vmem:[#allocation5 + $0x20] sm:$0xff]  ;;  %s160_s3 = sshll.u32 %s323_s2, 4  ;;  %s162_s11 = sshll.u32 %s368_s4, 4  ;;  %s161_s3 = int_to_ptr.vmem [resolvable:$true] %s160_s3  ;;  %s163_s11 = int_to_ptr.hbm [resolvable:$true] %s162_s11 }
  0x15   :  { %106 = vmatpush.msra.mxu0 %v82_v2  ;;  %v78_v5 = vld [vmem:[#allocation5 + $0x10] sm:$0xff]  ;;  %v77_v6 = vld [vmem:[#allocation5 + $0x8] sm:$0xff]  ;;  %v75_v7 = vld [vmem:[#allocation2] sm:$0xff]  ;;  %v141_v19 = vand.u32 127, %v140_v15 }
  0x16   :  { %127 = vmatpush.msra.mxu1 %v81_v1  ;;  %v76_v8 = vld [vmem:[#allocation5] sm:$0xff] }
  0x17   :  { %107 = vmatpush.msra.mxu0 %v80_v4  ;;  %v84_v9 = vld [vmem:[#allocation7] sm:$0x3]  ;;  %v137_v18 = vld [vmem:[#allocation8] sm:$0xff]  ;;  %vm142_vm1 = vcmp.lt.s32.totalorder %v141_v19, 16 }
  0x18   :  { %128 = vmatpush.msra.mxu1 %v79_v3  ;;  %v87_v10 = vperm.slane %v84_v9, 1  ;;  %v86_v16 = vperm.slane %v84_v9, 0 }
  0x19   :  { %108 = vmatpush.msra.mxu0 %v78_v5 }
  0x1a   :  { %129 = vmatpush.msra.mxu1 %v77_v6 }
  0x1b   :  { %175 = vmatmul.msk.f32.vlgmr.msra.gmra.mxu1 %vm90_vm0, %v75_v7  ;;  %109 = vmatpush.msra.mxu0 %v76_v8 }
  0x1c   :  { %174 = vmatmul.msk.f32.vlgmr.msra.gmra.mxu0 %vm90_vm0, %v75_v7 }
  0x98   :  { %v131_v11 = vpop.f32.mrf.mxu1 }
  0x99   :  { %v132_v12 = vadd.f32 %v131_v11, %v87_v10  ;;  %v111_v17 = vpop.f32.mrf.mxu0 }
  0x9a   :  { %v112_v20 = vadd.f32 %v111_v17, %v86_v16 }
  0x9b   :  { %v134_v13 = vmul.f32 0.5, %v132_v12 }
  0x9d   :  { %v135_v14 = vmul.f32 1.442695, %v134_v13 }
  0x9f   :  { %183 = vpow2.f32 %v135_v14 }
  0xa5   :  { %v184_v21 = vpop.eup %183 }
  0xa6   :  { %v138_v22 = vmul.f32 %v184_v21, %v137_v18 }
  0xa8   :  { %v139_v23 = vadd.f32 %v138_v22, %v112_v20 }
  0xaa   :  { %v143_v24 = vsel %vm142_vm1, %v139_v23, -1e+30 }
  0xab   :  { %144 = vmax.xlane.f32.xlu0 %v143_v24 }
 0x11e   :  { %v145_v25 = vpop.xlane.xlu0 %144 }
 0x11f   :  { %v146_v26 = vsub.f32 %v143_v24, %v145_v25 }
 0x121   :  { %v147_v27 = vmul.f32 1.442695, %v146_v26 }
 0x123   :  { %185 = vpow2.f32 %v147_v27 }
 0x129   :  { %v186_v28 = vpop.eup %185 }
 0x12a   :  { %149 = vadd.xlane.f32.xlu0 %v186_v28 }
 0x19d   :  { %v150_v29 = vpop.xlane.xlu0 %149 }
 0x19e   :  { %187 = vlog2.f32 %v150_v29 }
 0x1a4   :  { %v188_v30 = vpop.eup %187 }
 0x1a5   :  { %v152_v31 = vmul.f32 0.6931472, %v188_v30 }
 0x1a7   :  { %v153_v32 = vsub.f32 %v146_v26, %v152_v31 }
 0x1a9   :  { %154 = vst [vmem:[#allocation10] sm:$0xff] %v153_v32 }
 0x1aa   :  { %165 = dma.vmem_to_hbm [thread:$0]  %s161_s3, 128, %s163_s11, [#allocation4]  }
 0x1ab   :  { %315 = dma.done.wait [#allocation4], 128  }
 0x1ac   :  { %316 = vsyncadd [#allocation4], 4294967168 }
 0x1ad   :  { %170 = vsyncpa [#allocation3], 1 }
 0x1ae   :  { %171 = vsyncpa [#allocation6], 1 }
 0x1af   :  { %172 = vsyncpa [#allocation9], 1 }
 0x1b0   :  { %173 = vsyncpa [#allocation4], 1 }

</bundles_post_ra>
